<compile_context>
chip_gen: v5e
topology: v5e:2x2
jax: 0.10.0
libtpu: 0.0.40
codegen_flags: <defaults>
</compile_context>

<pallas_src>
import functools
import math

import jax
import jax.numpy as jnp
from jax.experimental import pallas as pl
from jax.experimental.pallas import tpu as pltpu

_LANE = 128


def _cdiv(a, b):
    return (a + b - 1) // b


def _row_split(b, n):
    """Smallest power-of-two S with S | n and (b*S) % 8 == 0 (falls back toward 1)."""
    s = 8 // math.gcd(b, 8)
    while s > 1 and n % s != 0:
        s //= 2
    return s


def _choose_chunk(r, n2, itemsize, target_block_bytes):
    """Largest lane-chunk (multiple of 128, or the full row) within the byte budget."""
    if n2 <= _LANE:
        return n2
    target = (target_block_bytes // (r * itemsize)) // _LANE * _LANE
    target = max(target, _LANE)
    if n2 <= target:
        return n2
    return target


def _dice_kernel(x_ref, t_ref, num_ref, den_ref, num_acc, den_acc,
                 *, n2, chunk, kpp, needs_mask):
    k = pl.program_id(1)

    @pl.when(k == 0)
    def _init():
        num_acc[...] = jnp.zeros_like(num_acc)
        den_acc[...] = jnp.zeros_like(den_acc)

    x = x_ref[...].astype(jnp.float32)   # (R, chunk)
    t = t_ref[...].astype(jnp.float32)   # (R, chunk)

    if needs_mask:
        # Zero out lanes past the true row length (ragged tail / dummy blocks).
        p = pl.program_id(0)
        c = p * kpp + k                                   # logical chunk index
        col = c * chunk + jax.lax.broadcasted_iota(jnp.int32, x.shape, 1)
        keep = col < n2
        x = jnp.where(keep, x, 0.0)
        t = jnp.where(keep, t, 0.0)

    # Hot path: pure elementwise (VPU) accumulation, no cross-lane reductions.
    num_acc[...] += x * t
    den_acc[...] += x + t

    @pl.when(k == pl.num_programs(1) - 1)
    def _finalize():
        # Single cross-lane reduction per partition.
        num_ref[...] = jnp.sum(num_acc[...], axis=-1, keepdims=True)[None]
        den_ref[...] = jnp.sum(den_acc[...], axis=-1, keepdims=True)[None]


def dice_loss(inputs, targets, smooth=0.001, target_block_bytes=1 << 20):
    """Pallas TPU implementation of Dice.forward(inputs, targets) (mean reduction)."""
    assert inputs.shape == targets.shape
    b = inputs.shape[0]
    x = inputs.reshape(b, -1)
    t = targets.reshape(b, -1)
    n = x.shape[1]

    # Sublane packing: split each sample into `s` rows (free contiguous reshape).
    s = _row_split(b, n)
    r = b * s
    n2 = n // s
    x = x.reshape(r, n2)
    t = t.reshape(r, n2)

    itemsize = max(x.dtype.itemsize, t.dtype.itemsize)
    chunk = _choose_chunk(r, n2, itemsize, target_block_bytes)
    num_chunks = _cdiv(n2, chunk)

    # Parallel partitioning of the feature reduction (uses both v7x TensorCores).
    num_parts = 2 if num_chunks >= 2 else 1
    kpp = _cdiv(num_chunks, num_parts)                    # chunks per partition
    needs_mask = (n2 % chunk != 0) or (num_parts * kpp != num_chunks)

    def in_index_map(p, k):
        c = p * kpp + k
        # Clamp so an overflow (fully-masked) step never issues an OOB block DMA.
        return (0, jnp.minimum(c, num_chunks - 1))

    kernel = functools.partial(
        _dice_kernel, n2=n2, chunk=chunk, kpp=kpp, needs_mask=needs_mask)

    num_part, den_part = pl.pallas_call(
        kernel,
        out_shape=(
            jax.ShapeDtypeStruct((num_parts, r, 1), jnp.float32),
            jax.ShapeDtypeStruct((num_parts, r, 1), jnp.float32),
        ),
        grid_spec=pltpu.PrefetchScalarGridSpec(
            num_scalar_prefetch=0,
            grid=(num_parts, kpp),
            in_specs=[
                pl.BlockSpec((r, chunk), in_index_map),
                pl.BlockSpec((r, chunk), in_index_map),
            ],
            out_specs=[
                pl.BlockSpec((1, r, 1), lambda p, k: (p, 0, 0)),
                pl.BlockSpec((1, r, 1), lambda p, k: (p, 0, 0)),
            ],
            scratch_shapes=[
                pltpu.VMEM((r, chunk), jnp.float32),   # intersection accumulator
                pltpu.VMEM((r, chunk), jnp.float32),   # sum(x) + sum(t) accumulator
            ],
        ),
        compiler_params=pltpu.CompilerParams(
            dimension_semantics=("parallel", "arbitrary"),
            vmem_limit_bytes=32 * 1024 * 1024,
        ),
    )(x, t)

    # Tiny epilogue on (num_parts, r) scalars: combine partitions and row-splits.
    inter = num_part[..., 0].sum(axis=0).reshape(b, s).sum(axis=-1)   # (B,)
    sums = den_part[..., 0].sum(axis=0).reshape(b, s).sum(axis=-1)    # (B,)
    dice = (2.0 * inter + smooth) / (sums + smooth)
    return jnp.mean(dice)


def _dice_ref(inputs, targets, smooth=0.001):
    b = inputs.shape[0]
    iflat = inputs.reshape(b, -1).astype(jnp.float32)
    tflat = targets.reshape(b, -1).astype(jnp.float32)
    inter = jnp.sum(iflat * tflat, axis=-1)
    dice = (2.0 * inter + smooth) / (jnp.sum(iflat, -1) + jnp.sum(tflat, -1) + smooth)
    return jnp.mean(dice)


if __name__ == "__main__":
    key = jax.random.PRNGKey(0)
    k1, k2, k3, k4, k5, k6 = jax.random.split(key, 6)

    # Main case: NCHW segmentation-style inputs.
    B, C, H, W = 2, 4, 16, 16
    inputs = jax.random.uniform(k1, (B, C, H, W), dtype=jnp.float32)
    targets = (jax.random.uniform(k2, (B, C, H, W), dtype=jnp.float32) > 0.5).astype(
        jnp.float32)
    loss = jax.block_until_ready(dice_loss(inputs, targets, smooth=0.001))
    ref = _dice_ref(inputs, targets, smooth=0.001)
    assert jnp.allclose(loss, ref, rtol=1e-5, atol=1e-6), (loss, ref)

    # Ragged / masked-tail case (rows not a multiple of 8, tail < chunk).
    x2 = jax.random.uniform(k3, (3, 3, 7, 9), dtype=jnp.float32)
    t2 = (jax.random.uniform(k4, (3, 3, 7, 9), dtype=jnp.float32) > 0.5).astype(
        jnp.float32)
    loss2 = jax.block_until_ready(
        dice_loss(x2, t2, smooth=0.001, target_block_bytes=1536))
    ref2 = _dice_ref(x2, t2, smooth=0.001)
    assert jnp.allclose(loss2, ref2, rtol=1e-5, atol=1e-6), (loss2, ref2)

    # Odd chunk-count case: 2-way partition with a clamped, fully-masked dummy block.
    x3 = jax.random.uniform(k5, (2, 1200), dtype=jnp.float32)
    t3 = (jax.random.uniform(k6, (2, 1200), dtype=jnp.float32) > 0.5).astype(
        jnp.float32)
    loss3 = jax.block_until_ready(
        dice_loss(x3, t3, smooth=0.001, target_block_bytes=4096))
    ref3 = _dice_ref(x3, t3, smooth=0.001)
    assert jnp.allclose(loss3, ref3, rtol=1e-5, atol=1e-6), (loss3, ref3)

    print("KERNEL_OK")
</pallas_src>

<mosaic_0001>
module attributes {stable_mosaic.version = 11 : i64} {
  func.func @_dice_kernel(%arg0: i32, %arg1: i32, %arg2: memref<8x256xf32, #tpu.memory_space<vmem>>, %arg3: memref<8x256xf32, #tpu.memory_space<vmem>>, %arg4: memref<1x8x1xf32, #tpu.memory_space<vmem>>, %arg5: memref<1x8x1xf32, #tpu.memory_space<vmem>>, %arg6: memref<8x256xf32, #tpu.memory_space<vmem>>, %arg7: memref<8x256xf32, #tpu.memory_space<vmem>>) attributes {dimension_semantics = [#tpu.dimension_semantics<parallel>, #tpu.dimension_semantics<arbitrary>], iteration_bounds = array<i64: 1, 1>, scalar_prefetch = 0 : i64, scratch_operands = 2 : i64, tpu.core_type = #tpu.core_type<tc>, window_params = [{transform_indices = @transform_0, window_bounds = array<i64: 8, 256>}, {transform_indices = @transform_1, window_bounds = array<i64: 8, 256>}, {transform_indices = @transform_2, window_bounds = array<i64: 1, 8, 1>}, {transform_indices = @transform_3, window_bounds = array<i64: 1, 8, 1>}]} {
    %c0_i32 = arith.constant 0 : i32
    %0 = arith.cmpi eq, %arg1, %c0_i32 : i32
    %1 = arith.extui %0 : i1 to i32
    %c0_i32_0 = arith.constant 0 : i32
    %2 = arith.cmpi ne, %1, %c0_i32_0 : i32
    scf.if %2 {
      %cst = arith.constant 0.000000e+00 : f32
      %16 = vector.broadcast %cst : f32 to vector<8x256xf32>
      %c0_14 = arith.constant 0 : index
      %c0_15 = arith.constant 0 : index
      %17 = vector.load %arg6[%c0_14, %c0_15] : memref<8x256xf32, #tpu.memory_space<vmem>>, vector<8x256xf32>
      tpu.vector_store %arg6[%c0_14, %c0_15], %16 {strides = array<i32>} : memref<8x256xf32, #tpu.memory_space<vmem>>, vector<8x256xf32>,
      %cst_16 = arith.constant 0.000000e+00 : f32
      %18 = vector.broadcast %cst_16 : f32 to vector<8x256xf32>
      %c0_17 = arith.constant 0 : index
      %c0_18 = arith.constant 0 : index
      %19 = vector.load %arg7[%c0_17, %c0_18] : memref<8x256xf32, #tpu.memory_space<vmem>>, vector<8x256xf32>
      tpu.vector_store %arg7[%c0_17, %c0_18], %18 {strides = array<i32>} : memref<8x256xf32, #tpu.memory_space<vmem>>, vector<8x256xf32>,
    } else {
    }
    %c0 = arith.constant 0 : index
    %c0_1 = arith.constant 0 : index
    %3 = vector.load %arg2[%c0, %c0_1] : memref<8x256xf32, #tpu.memory_space<vmem>>, vector<8x256xf32>
    %c0_2 = arith.constant 0 : index
    %c0_3 = arith.constant 0 : index
    %4 = vector.load %arg3[%c0_2, %c0_3] : memref<8x256xf32, #tpu.memory_space<vmem>>, vector<8x256xf32>
    %c0_4 = arith.constant 0 : index
    %c0_5 = arith.constant 0 : index
    %5 = vector.load %arg6[%c0_4, %c0_5] : memref<8x256xf32, #tpu.memory_space<vmem>>, vector<8x256xf32>
    %6 = arith.mulf %3, %4 : vector<8x256xf32>
    %7 = arith.addf %5, %6 : vector<8x256xf32>
    %c0_6 = arith.constant 0 : index
    %c0_7 = arith.constant 0 : index
    %8 = vector.load %arg6[%c0_6, %c0_7] : memref<8x256xf32, #tpu.memory_space<vmem>>, vector<8x256xf32>
    tpu.vector_store %arg6[%c0_6, %c0_7], %7 {strides = array<i32>} : memref<8x256xf32, #tpu.memory_space<vmem>>, vector<8x256xf32>,
    %c0_8 = arith.constant 0 : index
    %c0_9 = arith.constant 0 : index
    %9 = vector.load %arg7[%c0_8, %c0_9] : memref<8x256xf32, #tpu.memory_space<vmem>>, vector<8x256xf32>
    %10 = arith.addf %3, %4 : vector<8x256xf32>
    %11 = arith.addf %9, %10 : vector<8x256xf32>
    %c0_10 = arith.constant 0 : index
    %c0_11 = arith.constant 0 : index
    %12 = vector.load %arg7[%c0_10, %c0_11] : memref<8x256xf32, #tpu.memory_space<vmem>>, vector<8x256xf32>
    tpu.vector_store %arg7[%c0_10, %c0_11], %11 {strides = array<i32>} : memref<8x256xf32, #tpu.memory_space<vmem>>, vector<8x256xf32>,
    %c0_i32_12 = arith.constant 0 : i32
    %13 = arith.cmpi eq, %arg1, %c0_i32_12 : i32
    %14 = arith.extui %13 : i1 to i32
    %c0_i32_13 = arith.constant 0 : i32
    %15 = arith.cmpi ne, %14, %c0_i32_13 : i32
    scf.if %15 {
      %c0_14 = arith.constant 0 : index
      %c0_15 = arith.constant 0 : index
      %16 = vector.load %arg6[%c0_14, %c0_15] : memref<8x256xf32, #tpu.memory_space<vmem>>, vector<8x256xf32>
      %cst = arith.constant dense<0.000000e+00> : vector<8xf32>
      %17 = vector.multi_reduction <add>, %16, %cst [1] : vector<8x256xf32> to vector<8xf32>
      %18 = vector.shape_cast %17 : vector<8xf32> to vector<8x1xf32>
      %19 = vector.shape_cast %18 : vector<8x1xf32> to vector<1x8x1xf32>
      %c0_16 = arith.constant 0 : index
      %c0_17 = arith.constant 0 : index
      %c0_18 = arith.constant 0 : index
      %20 = vector.load %arg4[%c0_16, %c0_17, %c0_18] : memref<1x8x1xf32, #tpu.memory_space<vmem>>, vector<1x8x1xf32>
      tpu.vector_store %arg4[%c0_16, %c0_17, %c0_18], %19 {strides = array<i32>} : memref<1x8x1xf32, #tpu.memory_space<vmem>>, vector<1x8x1xf32>,
      %c0_19 = arith.constant 0 : index
      %c0_20 = arith.constant 0 : index
      %21 = vector.load %arg7[%c0_19, %c0_20] : memref<8x256xf32, #tpu.memory_space<vmem>>, vector<8x256xf32>
      %cst_21 = arith.constant dense<0.000000e+00> : vector<8xf32>
      %22 = vector.multi_reduction <add>, %21, %cst_21 [1] : vector<8x256xf32> to vector<8xf32>
      %23 = vector.shape_cast %22 : vector<8xf32> to vector<8x1xf32>
      %24 = vector.shape_cast %23 : vector<8x1xf32> to vector<1x8x1xf32>
      %c0_22 = arith.constant 0 : index
      %c0_23 = arith.constant 0 : index
      %c0_24 = arith.constant 0 : index
      %25 = vector.load %arg5[%c0_22, %c0_23, %c0_24] : memref<1x8x1xf32, #tpu.memory_space<vmem>>, vector<1x8x1xf32>
      tpu.vector_store %arg5[%c0_22, %c0_23, %c0_24], %24 {strides = array<i32>} : memref<1x8x1xf32, #tpu.memory_space<vmem>>, vector<1x8x1xf32>,
    } else {
    }
    return
  }
  func.func @transform_0(%arg0: i32, %arg1: i32) -> (i32, i32) {
    %c1_i32 = arith.constant 1 : i32
    %0 = arith.muli %arg0, %c1_i32 : i32
    %1 = arith.addi %0, %arg1 : i32
    %c0_i32 = arith.constant 0 : i32
    %2 = arith.minsi %1, %c0_i32 : i32
    %c0_i32_0 = arith.constant 0 : i32
    %c0_i32_1 = arith.constant 0 : i32
    return %c0_i32_0, %2 : i32, i32
  }
  func.func @transform_1(%arg0: i32, %arg1: i32) -> (i32, i32) {
    %c1_i32 = arith.constant 1 : i32
    %0 = arith.muli %arg0, %c1_i32 : i32
    %1 = arith.addi %0, %arg1 : i32
    %c0_i32 = arith.constant 0 : i32
    %2 = arith.minsi %1, %c0_i32 : i32
    %c0_i32_0 = arith.constant 0 : i32
    %c0_i32_1 = arith.constant 0 : i32
    return %c0_i32_0, %2 : i32, i32
  }
  func.func @transform_2(%arg0: i32, %arg1: i32) -> (i32, i32, i32) {
    %c0_i32 = arith.constant 0 : i32
    %c0_i32_0 = arith.constant 0 : i32
    %c0_i32_1 = arith.constant 0 : i32
    return %arg0, %c0_i32, %c0_i32_0 : i32, i32, i32
  }
  func.func @transform_3(%arg0: i32, %arg1: i32) -> (i32, i32, i32) {
    %c0_i32 = arith.constant 0 : i32
    %c0_i32_0 = arith.constant 0 : i32
    %c0_i32_1 = arith.constant 0 : i32
    return %arg0, %c0_i32, %c0_i32_0 : i32, i32, i32
  }
}

</mosaic_0001>

<bundles_post_ra>
// kernel: tpu_custom_call.1
= control target key start
LH: loop header
LB: loop body
LE: loop exit
PB: predicated region body
PF: predicated region fallthrough
CT: control target
= control target key end

     0   :  { %9 = vsyncpa [#allocation5], 0  ;;  %s207_s0 = inlined_call_operand.hbm [shape: f32[8,256], index: 0, kind: input, shape index: {}]   ;;  %s208_s1 = inlined_call_operand.hbm [shape: f32[8,256], index: 1, kind: input, shape index: {}]   ;;  %s209_s2 = inlined_call_operand.vmem [shape: f32[1,8,1], index: 2, kind: output, shape index: {0}]   ;;  %s210_s3 = inlined_call_operand.vmem [shape: f32[1,8,1], index: 3, kind: output, shape index: {1}]  }
   0x1   :  { %s22_s14 = sshll.u32 %s207_s0, 4  ;;  %s23_s14 = int_to_ptr.hbm [resolvable:$true] %s22_s14 }
   0x2   :  { %10 = vsyncpa [#allocation7], 0  ;;  %s173_s15 = smov [#allocation4]   ;;  %s39_s19 = sshll.u32 %s208_s1, 4  ;;  %s40_s19 = int_to_ptr.hbm [resolvable:$true] %s39_s19 }
   0x3   :  { %s24_s16 = sshll.u32 %s173_s15, 4  ;;  %s174_s20 = smov [#allocation6]   ;;  %s25_s16 = int_to_ptr.vmem [resolvable:$true] %s24_s16 }
   0x4   :  { %27 = dma.hbm_to_vmem [thread:$0]  %s23_s14, 256, %s25_s16, [#allocation5]  }
   0x5   :  { %s41_s21 = sshll.u32 %s174_s20, 4  ;;  %s42_s21 = int_to_ptr.vmem [resolvable:$true] %s41_s21 }
   0x6   :  { %44 = dma.hbm_to_vmem [thread:$0]  %s40_s19, 256, %s42_s21, [#allocation7]  }
   0x7   :  { %169 = dma.done.wait [#allocation5], 256  }
   0x8   :  { %170 = vsyncadd [#allocation5], 4294967040 }
   0x9   :  { %171 = dma.done.wait [#allocation7], 256  }
   0xa   :  { %172 = vsyncadd [#allocation7], 4294967040  ;;  %v69_v0 = vld [vmem:[#allocation4] sm:$0xff]  ;;  %v70_v1 = vld [vmem:[#allocation4 + $0x8] sm:$0xff]  ;;  %vm97_vm0 = vcmask 7168  }
   0xb   :  { %v71_v2 = vld [vmem:[#allocation6] sm:$0xff]  ;;  %v72_v3 = vld [vmem:[#allocation6 + $0x8] sm:$0xff] }
   0xc   :  { %v75_v4 = vmul.f32 %v71_v2, %v69_v0  ;;  %v76_v5 = vmul.f32 %v72_v3, %v70_v1  ;;  %v83_v7 = vadd.f32 %v71_v2, %v69_v0  ;;  %v84_v8 = vadd.f32 %v72_v3, %v70_v1 }
   0xe   :  { %v94_v6 = vadd.f32 %v76_v5, %v75_v4  ;;  %v101_v9 = vadd.f32 %v84_v8, %v83_v7 }
  0x10   :  { %95 = vadd.xlane.f32.xlu0 %v94_v6 }
  0x18   :  { %102 = vadd.xlane.f32.xlu0 %v101_v9 }
  0x83   :  { %v96_v10 = vpop.xlane.xlu0 %95 }
  0x84   :  { %98 = vst.msk [vmem:[%s209_s2] sm:$0xff] %vm97_vm0, %v96_v10 }
  0x8b   :  { %v103_v11 = vpop.xlane.xlu0 %102 }
  0x8c   :  { %104 = vst.msk [vmem:[%s210_s3] sm:$0xff] %vm97_vm0, %v103_v11 }
  0x8d   :  { %113 = vsyncpa [#allocation5], 1 }
  0x8e   :  { %114 = vsyncpa [#allocation7], 1 }

</bundles_post_ra>
